<compile_context>
chip_gen: v5e
topology: v5e:2x2
jax: 0.10.0
libtpu: 0.0.40
codegen_flags: <defaults>
</compile_context>

<pallas_src>
import functools
import math

import jax
import jax.numpy as jnp
from jax.experimental import pallas as pl
from jax.experimental.pallas import tpu as pltpu


def _round_up(x, m):
    return (x + m - 1) // m * m


def _default_vmem_limit_bytes():
    # Size the scoped-VMEM budget to the attached generation: ~3/4 of physical,
    # clamped to [32 MiB, 100 MiB] (=> ~48 MiB on v7x, ~96 MiB on v5e/v6e).
    try:
        cap = int(pltpu.get_tpu_info().vmem_capacity_bytes)
    except Exception:
        cap = 64 * 1024 * 1024
    return max(32 * 1024 * 1024, min(cap * 3 // 4, 100 * 1024 * 1024))


def _supcon_kernel(q_ref, k_ref, lab_col_ref, lab_row_ref, cnt_ref, out_ref,
                   s_sc, psum_sc,
                   *, inv_temp, loss_scale, n_valid, n_pad, block_m, block_n):
    i = pl.program_id(0)          # row-block index   ("parallel")
    j = pl.program_id(1)          # col-block index   ("arbitrary" reduction)

    @pl.when(j == 0)
    def _init():
        s_sc[...] = jnp.zeros_like(s_sc)
        psum_sc[...] = jnp.zeros_like(psum_sc)

    # --- similarity tile on the MXU: q . k^T, f32 accumulation ---------------
    # Operands are pre-normalized in the wrapper; 1/temperature is already
    # folded into q, so sim is the reference's feats_dot_feats / temperature.
    sim = jax.lax.dot_general(
        q_ref[...], k_ref[...],
        dimension_numbers=(((1,), (1,)), ((), ())),
        preferred_element_type=jnp.float32)                    # (bm, bn)

    # --- masks from small broadcast vectors (no full-tile iotas) -------------
    row_g = i * block_m + jax.lax.broadcasted_iota(jnp.int32, (block_m, 1), 0)
    col_g = j * block_n + jax.lax.broadcasted_iota(jnp.int32, (1, block_n), 1)
    valid = row_g != col_g                                     # "logits_mask"
    if n_valid < n_pad:                                        # compile-time flag
        valid = jnp.logical_and(valid, col_g < n_valid)        # drop padded cols
    pos = jnp.logical_and(valid, lab_col_ref[...] == lab_row_ref[...])

    # --- constant-shift softmax accumulation ---------------------------------
    # Rows are unit-norm, so sim <= 1/temp (row max = diagonal); the SupCon
    # forward is shift-invariant, so the constant shift is exact.
    p = jnp.where(valid, jnp.exp(sim - inv_temp), 0.0)
    s_sc[...] += jnp.sum(p, axis=1, keepdims=True)
    psum_sc[...] += jnp.sum(jnp.where(pos, sim, 0.0), axis=1, keepdims=True)

    @pl.when(j == pl.num_programs(1) - 1)
    def _finalize():
        cnt = cnt_ref[...]                                     # precomputed positives/row
        # sum_pos(logits - logZ)/cnt = sum_pos(sim)/cnt - shift - log(sum exp(sim-shift))
        mean_log_prob_pos = (psum_sc[...] / jnp.maximum(cnt, 1.0)
                             - inv_temp - jnp.log(s_sc[...]))
        loss_rows = (-loss_scale) * mean_log_prob_pos          # (bm, 1)
        keep = jnp.logical_and(row_g < n_valid, cnt > 0.0)
        out_ref[...] = jnp.where(keep, loss_rows, 0.0)


def supcon_loss(features, labels, temp, *, mxu_dtype=jnp.bfloat16,
                block_m=None, block_n=None):
    """features: [N, D] float, labels: [N] int. Returns scalar float32 loss.

    mxu_dtype=jnp.bfloat16: fast MXU path (bf16 operands, f32 accumulation).
    mxu_dtype=jnp.float32:  matches the PyTorch reference to ~1e-5.
    """
    temperature, base_temperature = float(temp[0]), float(temp[1])
    inv_temp = 1.0 / temperature
    n, d = features.shape
    d_pad = _round_up(d, 128)

    # --- tile selection -------------------------------------------------------
    if block_m is None or block_n is None:
        if n <= 1024:
            bm = bn = _round_up(n, 8)            # single tile, grid (1,1)
        else:
            bm, bn = 256, 512                    # asymmetric tiles for big N
        block_m = bm if block_m is None else block_m
        block_n = bn if block_n is None else block_n
    n_pad = _round_up(n, math.lcm(block_m, block_n))

    # --- wrapper-side prep: normalize once, fold temperature, cast, pad ------
    f = features.astype(jnp.float32)
    # x / max(||x||, 1e-12)  via a single rsqrt
    fn = f * jax.lax.rsqrt(jnp.maximum(jnp.sum(f * f, axis=1, keepdims=True), 1e-24))
    q = (fn * inv_temp).astype(mxu_dtype)        # row operand (temperature folded)
    k = fn.astype(mxu_dtype)                     # column operand

    lab = labels.astype(jnp.int32)
    # per-row positive count (same-label occurrences minus self), O(N log N)
    sorted_lab = jnp.sort(lab)
    cnt = (jnp.searchsorted(sorted_lab, lab, side='right')
           - jnp.searchsorted(sorted_lab, lab, side='left') - 1).astype(jnp.float32)

    if (n_pad, d_pad) != (n, d):
        q = jnp.pad(q, ((0, n_pad - n), (0, d_pad - d)))
        k = jnp.pad(k, ((0, n_pad - n), (0, d_pad - d)))
    if n_pad != n:
        lab = jnp.pad(lab, (0, n_pad - n), constant_values=-1)  # masked via col_valid
        cnt = jnp.pad(cnt, (0, n_pad - n))
    lab_col = lab.reshape(n_pad, 1)
    lab_row = lab.reshape(1, n_pad)
    cnt_col = cnt.reshape(n_pad, 1)

    grid = (n_pad // block_m, n_pad // block_n)

    kernel = functools.partial(
        _supcon_kernel,
        inv_temp=inv_temp,
        loss_scale=temperature / base_temperature,
        n_valid=n,
        n_pad=n_pad,
        block_m=block_m,
        block_n=block_n,
    )

    per_row = pl.pallas_call(
        kernel,
        out_shape=jax.ShapeDtypeStruct((n_pad, 1), jnp.float32),
        grid_spec=pltpu.PrefetchScalarGridSpec(
            num_scalar_prefetch=0,
            grid=grid,
            in_specs=[
                pl.BlockSpec((block_m, d_pad), lambda i, j: (i, 0)),  # q rows
                pl.BlockSpec((block_n, d_pad), lambda i, j: (j, 0)),  # k cols (re-streamed)
                pl.BlockSpec((block_m, 1),     lambda i, j: (i, 0)),  # labels (column)
                pl.BlockSpec((1, block_n),     lambda i, j: (0, j)),  # labels (row)
                pl.BlockSpec((block_m, 1),     lambda i, j: (i, 0)),  # positive counts
            ],
            out_specs=pl.BlockSpec((block_m, 1), lambda i, j: (i, 0)),
            scratch_shapes=[pltpu.VMEM((block_m, 1), jnp.float32)] * 2,  # s, pos_sum
        ),
        compiler_params=pltpu.CompilerParams(
            dimension_semantics=("parallel", "arbitrary"),
            vmem_limit_bytes=_default_vmem_limit_bytes(),
        ),
    )(q, k, lab_col, lab_row, cnt_col)

    # Tiny O(N) reduction: padded / positive-less rows were zeroed in-kernel.
    return jnp.sum(per_row) / jnp.float32(n)


def _reference_supcon(features, labels, temp):
    # pure-JAX mirror of the PyTorch forward
    temperature, base_temperature = float(temp[0]), float(temp[1])
    f = features.astype(jnp.float32)
    fn = f / jnp.maximum(jnp.linalg.norm(f, axis=1, keepdims=True), 1e-12)
    sim = (fn @ fn.T) / temperature
    logits = sim - jnp.max(sim, axis=1, keepdims=True)
    mask = (labels[None, :] == labels[:, None]).astype(jnp.float32)
    logits_mask = 1.0 - jnp.eye(f.shape[0], dtype=jnp.float32)
    mask = mask * logits_mask
    exp_logits = jnp.exp(logits) * logits_mask
    log_prob = logits - jnp.log(exp_logits.sum(1, keepdims=True))
    mean_log_prob_pos = (mask * log_prob).sum(1) / mask.sum(1)
    return (-(temperature / base_temperature) * mean_log_prob_pos).mean()


if __name__ == "__main__":
    key = jax.random.PRNGKey(0)
    k1, k2 = jax.random.split(key)
    temp = [0.07, 0.07]

    # Case 1: N multiple of 8 (no padding), every row has a positive partner.
    N1, D1 = 8, 32
    feats1 = jax.random.normal(k1, (N1, D1), dtype=jnp.float32)
    labels1 = jnp.array([0, 1, 2, 3, 0, 1, 2, 3], dtype=jnp.int32)
    ref1 = _reference_supcon(feats1, labels1, temp)

    out1_f32 = supcon_loss(feats1, labels1, temp, mxu_dtype=jnp.float32)
    jax.block_until_ready(out1_f32)
    assert jnp.allclose(out1_f32, ref1, rtol=1e-4, atol=1e-4), (out1_f32, ref1)

    out1_bf16 = supcon_loss(feats1, labels1, temp)   # fast bf16-MXU path
    jax.block_until_ready(out1_bf16)
    assert jnp.allclose(out1_bf16, ref1, rtol=5e-2, atol=5e-2), (out1_bf16, ref1)

    # Case 2: ragged N / D -> exercises the padded-row/column masking path.
    N2, D2 = 10, 48
    feats2 = jax.random.normal(k2, (N2, D2), dtype=jnp.float32)
    labels2 = jnp.array([0, 1, 2, 0, 1, 2, 0, 1, 2, 0], dtype=jnp.int32)
    ref2 = _reference_supcon(feats2, labels2, temp)

    out2_f32 = supcon_loss(feats2, labels2, temp, mxu_dtype=jnp.float32)
    jax.block_until_ready(out2_f32)
    assert jnp.allclose(out2_f32, ref2, rtol=1e-4, atol=1e-4), (out2_f32, ref2)

    print("KERNEL_OK")
</pallas_src>

<mosaic_0001>
module attributes {stable_mosaic.version = 11 : i64} {
  func.func @_supcon_kernel(%arg0: i32, %arg1: i32, %arg2: memref<8x128xf32, #tpu.memory_space<vmem>>, %arg3: memref<8x128xf32, #tpu.memory_space<vmem>>, %arg4: memref<8x1xi32, #tpu.memory_space<vmem>>, %arg5: memref<1x8xi32, #tpu.memory_space<vmem>>, %arg6: memref<8x1xf32, #tpu.memory_space<vmem>>, %arg7: memref<8x1xf32, #tpu.memory_space<vmem>>, %arg8: memref<8x1xf32, #tpu.memory_space<vmem>>, %arg9: memref<8x1xf32, #tpu.memory_space<vmem>>) attributes {dimension_semantics = [#tpu.dimension_semantics<parallel>, #tpu.dimension_semantics<arbitrary>], iteration_bounds = array<i64: 1, 1>, scalar_prefetch = 0 : i64, scratch_operands = 2 : i64, tpu.core_type = #tpu.core_type<tc>, window_params = [{transform_indices = @transform_0, window_bounds = array<i64: 8, 128>}, {transform_indices = @transform_1, window_bounds = array<i64: 8, 128>}, {transform_indices = @transform_2, window_bounds = array<i64: 8, 1>}, {transform_indices = @transform_3, window_bounds = array<i64: 1, 8>}, {transform_indices = @transform_4, window_bounds = array<i64: 8, 1>}, {transform_indices = @transform_5, window_bounds = array<i64: 8, 1>}]} {
    %c0_i32 = arith.constant 0 : i32
    %0 = arith.cmpi eq, %arg1, %c0_i32 : i32
    %1 = arith.extui %0 : i1 to i32
    %c0_i32_0 = arith.constant 0 : i32
    %2 = arith.cmpi ne, %1, %c0_i32_0 : i32
    scf.if %2 {
      %cst_24 = arith.constant 0.000000e+00 : f32
      %43 = vector.broadcast %cst_24 : f32 to vector<8x1xf32>
      %c0_25 = arith.constant 0 : index
      %c0_26 = arith.constant 0 : index
      %44 = vector.load %arg8[%c0_25, %c0_26] : memref<8x1xf32, #tpu.memory_space<vmem>>, vector<8x1xf32>
      tpu.vector_store %arg8[%c0_25, %c0_26], %43 {strides = array<i32>} : memref<8x1xf32, #tpu.memory_space<vmem>>, vector<8x1xf32>,
      %cst_27 = arith.constant 0.000000e+00 : f32
      %45 = vector.broadcast %cst_27 : f32 to vector<8x1xf32>
      %c0_28 = arith.constant 0 : index
      %c0_29 = arith.constant 0 : index
      %46 = vector.load %arg9[%c0_28, %c0_29] : memref<8x1xf32, #tpu.memory_space<vmem>>, vector<8x1xf32>
      tpu.vector_store %arg9[%c0_28, %c0_29], %45 {strides = array<i32>} : memref<8x1xf32, #tpu.memory_space<vmem>>, vector<8x1xf32>,
    } else {
    }
    %c0 = arith.constant 0 : index
    %c0_1 = arith.constant 0 : index
    %3 = vector.load %arg2[%c0, %c0_1] : memref<8x128xf32, #tpu.memory_space<vmem>>, vector<8x128xf32>
    %c0_2 = arith.constant 0 : index
    %c0_3 = arith.constant 0 : index
    %4 = vector.load %arg3[%c0_2, %c0_3] : memref<8x128xf32, #tpu.memory_space<vmem>>, vector<8x128xf32>
    %cst = arith.constant dense<0.000000e+00> : vector<8x8xf32>
    %5 = tpu.matmul %3, %4, %cst {dimension_numbers = #tpu.dot_dimension_numbers<[1], [1], [0], [0], [0, 0, 1, 0], [], []>} : vector<8x128xf32>, vector<8x128xf32>, vector<8x8xf32> -> vector<8x8xf32>
    %c8_i32 = arith.constant 8 : i32
    %6 = arith.muli %arg0, %c8_i32 : i32
    %7 = tpu.iota {dimensions = array<i32: 0>} : vector<8x1xi32>
    %8 = vector.broadcast %6 : i32 to vector<8x1xi32>
    %9 = arith.addi %8, %7 : vector<8x1xi32>
    %c8_i32_4 = arith.constant 8 : i32
    %10 = arith.muli %arg1, %c8_i32_4 : i32
    %11 = tpu.iota {dimensions = array<i32: 1>} : vector<1x8xi32>
    %12 = vector.broadcast %10 : i32 to vector<1x8xi32>
    %13 = arith.addi %12, %11 : vector<1x8xi32>
    %14 = vector.broadcast %9 : vector<8x1xi32> to vector<8x8xi32>
    %15 = vector.broadcast %13 : vector<1x8xi32> to vector<8x8xi32>
    %16 = arith.cmpi ne, %14, %15 : vector<8x8xi32>
    %c0_5 = arith.constant 0 : index
    %c0_6 = arith.constant 0 : index
    %17 = vector.load %arg4[%c0_5, %c0_6] : memref<8x1xi32, #tpu.memory_space<vmem>>, vector<8x1xi32>
    %c0_7 = arith.constant 0 : index
    %c0_8 = arith.constant 0 : index
    %18 = vector.load %arg5[%c0_7, %c0_8] : memref<1x8xi32, #tpu.memory_space<vmem>>, vector<1x8xi32>
    %19 = vector.broadcast %17 : vector<8x1xi32> to vector<8x8xi32>
    %20 = vector.broadcast %18 : vector<1x8xi32> to vector<8x8xi32>
    %21 = arith.cmpi eq, %19, %20 : vector<8x8xi32>
    %22 = arith.andi %16, %21 : vector<8x8xi1>
    %cst_9 = arith.constant 14.2857141 : f32
    %23 = vector.broadcast %cst_9 : f32 to vector<8x8xf32>
    %24 = arith.subf %5, %23 : vector<8x8xf32>
    %25 = math.exp %24 : vector<8x8xf32>
    %cst_10 = arith.constant 0.000000e+00 : f32
    %26 = vector.broadcast %cst_10 : f32 to vector<8x8xf32>
    %27 = arith.select %16, %25, %26 : vector<8x8xi1>, vector<8x8xf32>
    %c0_11 = arith.constant 0 : index
    %c0_12 = arith.constant 0 : index
    %28 = vector.load %arg8[%c0_11, %c0_12] : memref<8x1xf32, #tpu.memory_space<vmem>>, vector<8x1xf32>
    %cst_13 = arith.constant dense<0.000000e+00> : vector<8xf32>
    %29 = vector.multi_reduction <add>, %27, %cst_13 [1] : vector<8x8xf32> to vector<8xf32>
    %30 = vector.shape_cast %29 : vector<8xf32> to vector<8x1xf32>
    %31 = arith.addf %28, %30 : vector<8x1xf32>
    %c0_14 = arith.constant 0 : index
    %c0_15 = arith.constant 0 : index
    %32 = vector.load %arg8[%c0_14, %c0_15] : memref<8x1xf32, #tpu.memory_space<vmem>>, vector<8x1xf32>
    tpu.vector_store %arg8[%c0_14, %c0_15], %31 {strides = array<i32>} : memref<8x1xf32, #tpu.memory_space<vmem>>, vector<8x1xf32>,
    %c0_16 = arith.constant 0 : index
    %c0_17 = arith.constant 0 : index
    %33 = vector.load %arg9[%c0_16, %c0_17] : memref<8x1xf32, #tpu.memory_space<vmem>>, vector<8x1xf32>
    %cst_18 = arith.constant 0.000000e+00 : f32
    %34 = vector.broadcast %cst_18 : f32 to vector<8x8xf32>
    %35 = arith.select %22, %5, %34 : vector<8x8xi1>, vector<8x8xf32>
    %cst_19 = arith.constant dense<0.000000e+00> : vector<8xf32>
    %36 = vector.multi_reduction <add>, %35, %cst_19 [1] : vector<8x8xf32> to vector<8xf32>
    %37 = vector.shape_cast %36 : vector<8xf32> to vector<8x1xf32>
    %38 = arith.addf %33, %37 : vector<8x1xf32>
    %c0_20 = arith.constant 0 : index
    %c0_21 = arith.constant 0 : index
    %39 = vector.load %arg9[%c0_20, %c0_21] : memref<8x1xf32, #tpu.memory_space<vmem>>, vector<8x1xf32>
    tpu.vector_store %arg9[%c0_20, %c0_21], %38 {strides = array<i32>} : memref<8x1xf32, #tpu.memory_space<vmem>>, vector<8x1xf32>,
    %c0_i32_22 = arith.constant 0 : i32
    %40 = arith.cmpi eq, %arg1, %c0_i32_22 : i32
    %41 = arith.extui %40 : i1 to i32
    %c0_i32_23 = arith.constant 0 : i32
    %42 = arith.cmpi ne, %41, %c0_i32_23 : i32
    scf.if %42 {
      %c0_24 = arith.constant 0 : index
      %c0_25 = arith.constant 0 : index
      %43 = vector.load %arg6[%c0_24, %c0_25] : memref<8x1xf32, #tpu.memory_space<vmem>>, vector<8x1xf32>
      %c0_26 = arith.constant 0 : index
      %c0_27 = arith.constant 0 : index
      %44 = vector.load %arg9[%c0_26, %c0_27] : memref<8x1xf32, #tpu.memory_space<vmem>>, vector<8x1xf32>
      %cst_28 = arith.constant 1.000000e+00 : f32
      %45 = vector.broadcast %cst_28 : f32 to vector<8x1xf32>
      %46 = arith.maximumf %43, %45 : vector<8x1xf32>
      %47 = arith.divf %44, %46 : vector<8x1xf32>
      %cst_29 = arith.constant 14.2857141 : f32
      %48 = vector.broadcast %cst_29 : f32 to vector<8x1xf32>
      %49 = arith.subf %47, %48 : vector<8x1xf32>
      %c0_30 = arith.constant 0 : index
      %c0_31 = arith.constant 0 : index
      %50 = vector.load %arg8[%c0_30, %c0_31] : memref<8x1xf32, #tpu.memory_space<vmem>>, vector<8x1xf32>
      %51 = math.log %50 : vector<8x1xf32>
      %52 = arith.subf %49, %51 : vector<8x1xf32>
      %cst_32 = arith.constant -1.000000e+00 : f32
      %53 = vector.broadcast %cst_32 : f32 to vector<8x1xf32>
      %54 = arith.mulf %53, %52 : vector<8x1xf32>
      %c8_i32_33 = arith.constant 8 : i32
      %55 = vector.broadcast %c8_i32_33 : i32 to vector<8x1xi32>
      %56 = arith.cmpi slt, %9, %55 : vector<8x1xi32>
      %cst_34 = arith.constant 0.000000e+00 : f32
      %57 = vector.broadcast %cst_34 : f32 to vector<8x1xf32>
      %58 = arith.cmpf ogt, %43, %57 : vector<8x1xf32>
      %59 = arith.andi %56, %58 : vector<8x1xi1>
      %cst_35 = arith.constant 0.000000e+00 : f32
      %60 = vector.broadcast %cst_35 : f32 to vector<8x1xf32>
      %61 = arith.select %59, %54, %60 : vector<8x1xi1>, vector<8x1xf32>
      %c0_36 = arith.constant 0 : index
      %c0_37 = arith.constant 0 : index
      %62 = vector.load %arg7[%c0_36, %c0_37] : memref<8x1xf32, #tpu.memory_space<vmem>>, vector<8x1xf32>
      tpu.vector_store %arg7[%c0_36, %c0_37], %61 {strides = array<i32>} : memref<8x1xf32, #tpu.memory_space<vmem>>, vector<8x1xf32>,
    } else {
    }
    return
  }
  func.func @transform_0(%arg0: i32, %arg1: i32) -> (i32, i32) {
    %c0_i32 = arith.constant 0 : i32
    %c0_i32_0 = arith.constant 0 : i32
    return %arg0, %c0_i32 : i32, i32
  }
  func.func @transform_1(%arg0: i32, %arg1: i32) -> (i32, i32) {
    %c0_i32 = arith.constant 0 : i32
    %c0_i32_0 = arith.constant 0 : i32
    return %arg1, %c0_i32 : i32, i32
  }
  func.func @transform_2(%arg0: i32, %arg1: i32) -> (i32, i32) {
    %c0_i32 = arith.constant 0 : i32
    %c0_i32_0 = arith.constant 0 : i32
    return %arg0, %c0_i32 : i32, i32
  }
  func.func @transform_3(%arg0: i32, %arg1: i32) -> (i32, i32) {
    %c0_i32 = arith.constant 0 : i32
    %c0_i32_0 = arith.constant 0 : i32
    return %c0_i32, %arg1 : i32, i32
  }
  func.func @transform_4(%arg0: i32, %arg1: i32) -> (i32, i32) {
    %c0_i32 = arith.constant 0 : i32
    %c0_i32_0 = arith.constant 0 : i32
    return %arg0, %c0_i32 : i32, i32
  }
  func.func @transform_5(%arg0: i32, %arg1: i32) -> (i32, i32) {
    %c0_i32 = arith.constant 0 : i32
    %c0_i32_0 = arith.constant 0 : i32
    return %arg0, %c0_i32 : i32, i32
  }
}

</mosaic_0001>

<bundles_post_ra>
// kernel: tpu_custom_call.1
= control target key start
LH: loop header
LB: loop body
LE: loop exit
PB: predicated region body
PF: predicated region fallthrough
CT: control target
= control target key end

     0   :  { %v135_v1 = vmov 0   ;;  %vm24_vm0 = vcmask 7168   ;;  %v136_v4 = vmov 0.0   ;;  %v50_v5 = vlaneseq  ;;  %s190_s1 = inlined_call_operand.vmem [shape: f32[8,128], index: 1, kind: input, shape index: {}]   ;;  %s191_s0 = inlined_call_operand.vmem [shape: f32[8,128], index: 0, kind: input, shape index: {}]   ;;  %s192_s2 = inlined_call_operand.vmem [shape: s32[8,1], index: 2, kind: input, shape index: {}]   ;;  %s193_s3 = inlined_call_operand.vmem [shape: s32[1,8], index: 3, kind: input, shape index: {}]   ;;  %s194_s4 = inlined_call_operand.vmem [shape: f32[8,1], index: 4, kind: input, shape index: {}]   ;;  %s195_s5 = inlined_call_operand.vmem [shape: f32[8,1], index: 5, kind: output, shape index: {}]  }
   0x1   :  { %v28_v0 = vld [vmem:[%s190_s1] sm:$0xff]  ;;  %127 = vset.pattern.permute.xlu0 %v135_v1  ;;  %26 = vst.msk [vmem:[#allocation3] sm:$0xff] %vm24_vm0, %v136_v4  ;;  %vm73_vm4 = vcmask 64512  }
   0x2   :  { %v60_v2 = vld [vmem:[%s192_s2] sm:$0xff]  ;;  %44 = vmatpush.xpose.msra.mxu0 %v28_v0  ;;  %25 = vst.msk [vmem:[#allocation2] sm:$0xff] %vm24_vm0, %v136_v4  ;;  %v51_v7 = vshrl.u32 %v50_v5, 7  ;;  %v56_v8 = vand.u32 127, %v50_v5 }
   0x3   :  { %v27_v3 = vld [vmem:[%s191_s0] sm:$0xff]  ;;  %63 = vperm.xlu0 %127, %v60_v2  }
   0x4   :  { %v128_v6 = vld [vmem:[%s193_s3] ss:$0 sm:$0xff]  ;;  %vm59_vm2 = vcmp.ne.s32.totalorder %v51_v7, %v56_v8 }
   0x5   :  { %45 = vmatmul.f32.vlgmr.msra.gmra.mxu0 %v27_v3  ;;  %v90_v18 = vld [vmem:[%s194_s4] sm:$0xff] }
   0x6   :  { %v92_v19 = vmax.f32 %v90_v18, 1.0  ;;  %vm115_vm9 = vcmp.gt.f32.partialorder %v90_v18, 0.0 }
   0x8   :  { %v80_v20 = vld [vmem:[#allocation3] sm:$0xff]  ;;  %vm98_vm5 = vweird.f32 %v92_v19  ;;  %v104_v30 = vand.u32 2147483648, %v92_v19  ;;  %v102_v32 = vand.u32 2147483647, %v92_v19 }
   0x9   :  { %v72_v26 = vld [vmem:[#allocation2] sm:$0xff] }
   0xa   :  { %v105_v33 = vor.u32 1.1754944e-38, %v104_v30  ;;  %vm103_vm8 = vcmp.eq.f32.partialorder %v102_v32, 8.507059e+37 }
  0x75   :  { %v64_v9 = vpop.permute.xlu0 %63 }
  0x76   :  { %vm66_vm1 = vcmp.eq.s32.totalorder %v64_v9, %v128_v6 }
  0x77   :  { %vm67_vm3 = vmand %vm59_vm2, %vm66_vm1 }
  0x82   :  { %v46_v10 = vpop.f32.mrf.mxu0 }
  0x83   :  { %v123_v11 = vadd.f32 -14.285714, %v46_v10  ;;  %v81_v12 = vsel %vm67_vm3, %v46_v10, 0.0 }
  0x84   :  { %v82_v13 = vsel %vm73_vm4, %v81_v12, 0.0 }
  0x85   :  { %v69_v14 = vmul.f32 1.442695, %v123_v11  ;;  %83 = vadd.xlane.f32.xlu1 %v82_v13 }
  0x87   :  { %129 = vpow2.f32 %v69_v14 }
  0x88   :  { %131 = vrcp.f32 %v92_v19 }
  0x8d   :  { %v130_v15 = vpop.eup %129 }
  0x8e   :  { %v71_v16 = vsel %vm59_vm2, %v130_v15, 0.0  ;;  %v132_v21 = vpop.eup %131 }
  0x8f   :  { %v74_v17 = vsel %vm73_vm4, %v71_v16, 0.0  ;;  %v94_v24 = vmul.f32 %v132_v21, %v92_v19  ;;  %vm99_vm6 = vweird.f32 %v132_v21 }
  0x90   :  { %75 = vadd.xlane.f32.xlu0 %v74_v17  ;;  %vm100_vm7 = vmor %vm98_vm5, %vm99_vm6 }
  0x91   :  { %v95_v25 = vsub.f32 1.0, %v94_v24 }
  0x93   :  { %v96_v27 = vmul.f32 %v132_v21, %v95_v25 }
  0x95   :  { %v97_v31 = vadd.f32 %v132_v21, %v96_v27 }
  0x97   :  { %v101_v34 = vsel %vm100_vm7, %v132_v21, %v97_v31 }
  0x98   :  { %v106_v36 = vsel %vm103_vm8, %v105_v33, %v101_v34 }
  0xf8   :  { %v84_v22 = vpop.xlane.xlu1 %83 }
  0xf9   :  { %v85_v23 = vadd.f32 %v84_v22, %v80_v20 }
  0xfb   :  { %86 = vst.msk [vmem:[#allocation3] sm:$0xff] %vm24_vm0, %v85_v23 }
 0x102   :  { %v91_v37 = vld [vmem:[#allocation3] sm:$0xff] }
 0x103   :  { %v76_v28 = vpop.xlane.xlu0 %75  ;;  %v107_v38 = vmul.f32 %v106_v36, %v91_v37 }
 0x104   :  { %v77_v29 = vadd.f32 %v76_v28, %v72_v26 }
 0x105   :  { %v124_v40 = vadd.f32 -14.285714, %v107_v38 }
 0x106   :  { %79 = vst.msk [vmem:[#allocation2] sm:$0xff] %vm24_vm0, %v77_v29 }
 0x10d   :  { %v109_v35 = vld [vmem:[#allocation2] sm:$0xff] }
 0x10e   :  { %133 = vlog2.f32 %v109_v35 }
 0x114   :  { %v134_v39 = vpop.eup %133 }
 0x115   :  { %v111_v41 = vmul.f32 0.6931472, %v134_v39 }
 0x117   :  { %v112_v42 = vsub.f32 %v124_v40, %v111_v41 }
 0x119   :  { %v113_v43 = vmul.f32 -1.0, %v112_v42 }
 0x11b   :  { %v117_v44 = vsel %vm115_vm9, %v113_v43, 0.0 }
 0x11c   :  { %118 = vst.msk [vmem:[%s195_s5] sm:$0xff] %vm24_vm0, %v117_v44 }

</bundles_post_ra>
